<compile_context>
chip_gen: v6e
topology: v6e:2x2x1
jax: 0.10.0
libtpu: 0.0.40
codegen_flags: <defaults>
</compile_context>

<pallas_src>
import functools

import jax
import jax.numpy as jnp
from jax.experimental import pallas as pl
from jax.experimental.pallas import tpu as pltpu


def _round_up(n, m):
    return ((n + m - 1) // m) * m


# ----------------------------------------------------------------------------
# Fused MLP kernel: all Linear + activation layers in one invocation.
# refs = (x_ref, w0, b0, w1, b1, ..., w_last, b_last, o_ref)
#   x_ref  : (B, K0)        f32   (cast to bf16 in-kernel)
#   wi     : (Ki, Ni_pad)   bf16  hidden-layer weights (transposed vs. PyTorch)
#   bi     : (1, Ni_pad)    f32
#   w_last : (1, N_pad)     f32   if out_dim == 1  (VPU/XLU head)
#            (N_pad, out)   bf16  otherwise        (MXU head)
#   b_last : (1, out)       f32
#   o_ref  : (B, out)       f32
# ----------------------------------------------------------------------------
def _mlp_fused_kernel(*refs, n_hidden, scalar_head):
    x_ref = refs[0]
    o_ref = refs[-1]
    wb = refs[1:-1]

    if n_hidden == 0:
        acc = x_ref[...]  # f32
    else:
        # bf16 cast inside the kernel (no wrapper-side convert dispatch).
        y = x_ref[...].astype(jnp.bfloat16)
        for i in range(n_hidden):
            w = wb[2 * i][...]        # (K, N_pad) bf16
            b = wb[2 * i + 1][...]    # (1, N_pad) f32
            # MXU matmul with f32 accumulation; bias + activation in f32.
            acc = jnp.dot(y, w, preferred_element_type=jnp.float32) + b
            # F.leaky_relu (slope 0.01); nn.Dropout(0.3) is identity in eval mode.
            acc = jnp.maximum(acc, 0.01 * acc)
            if i < n_hidden - 1:
                y = acc.astype(jnp.bfloat16)

    w_last = wb[2 * n_hidden][...]
    b_last = wb[2 * n_hidden + 1][...]
    if scalar_head:
        # (B, N) * (1, N) on the VPU + lane reduce on the XLU: avoids a 1-column
        # MXU matmul on the critical tail and keeps the head in f32.
        logits = jnp.sum(acc * w_last, axis=-1, keepdims=True) + b_last
    else:
        logits = jnp.dot(acc.astype(jnp.bfloat16), w_last,
                         preferred_element_type=jnp.float32) + b_last

    # Exact sigmoid as a single EUP push: sigmoid(x) = 0.5*tanh(x/2) + 0.5.
    o_ref[...] = (0.5 * jnp.tanh(0.5 * logits) + 0.5).astype(o_ref.dtype)


def make_disc_forward(prepared_params, out_dim):
    """Build a jitted single-dispatch forward for a given layer structure."""
    n_hidden = len(prepared_params) - 1
    scalar_head = out_dim == 1
    kernel = functools.partial(
        _mlp_fused_kernel, n_hidden=n_hidden, scalar_head=scalar_head
    )

    @jax.jit
    def forward(params, x):
        # nn.Flatten(): NCHW -> (B, C*H*W); metadata-only reshape under jit.
        b = x.shape[0]
        y = x.reshape(b, -1)

        inputs = [y]
        for w, bias in params:
            inputs.append(w)
            inputs.append(bias)

        vmem = pltpu.MemorySpace.VMEM
        return pl.pallas_call(
            kernel,
            out_shape=jax.ShapeDtypeStruct((b, out_dim), jnp.float32),
            in_specs=[pl.BlockSpec(memory_space=vmem)] * len(inputs),
            out_specs=pl.BlockSpec(memory_space=vmem),
        )(*inputs)

    return forward


# ----------------------------------------------------------------------------
# Parameter construction (mirrors the module __init__ shapes / init scheme)
# ----------------------------------------------------------------------------
def _xavier_uniform(key, fan_in, fan_out, gain):
    # Same bound as torch.nn.init.xavier_uniform_ on a (out, in) weight.
    bound = gain * jnp.sqrt(6.0 / (fan_in + fan_out))
    # Stored as (in, out) so the kernel does x @ W.
    return jax.random.uniform(
        key, (fan_in, fan_out), jnp.float32, minval=-bound, maxval=bound
    )


def _bias_init(key, fan_in, fan_out):
    # PyTorch Linear default bias init: U(-1/sqrt(fan_in), 1/sqrt(fan_in)).
    bound = 1.0 / jnp.sqrt(jnp.float32(fan_in))
    return jax.random.uniform(
        key, (fan_out,), jnp.float32, minval=-bound, maxval=bound
    )


def init_params(config, key):
    leaky_gain = float(jnp.sqrt(2.0 / (1.0 + 0.01 ** 2)))  # calculate_gain('leaky_relu')
    sigmoid_gain = 1.0                                      # calculate_gain('sigmoid')

    sizes = [config["input_size"]] + list(config["hidden_dim"]) + [config["output_dim"]]
    params = []
    for i in range(len(sizes) - 1):
        fan_in, fan_out = sizes[i], sizes[i + 1]
        is_last = i == len(sizes) - 2
        gain = sigmoid_gain if is_last else leaky_gain
        key, kw, kb = jax.random.split(key, 3)
        w = _xavier_uniform(kw, fan_in, fan_out, gain)
        b = _bias_init(kb, fan_in, fan_out)
        params.append((w, b))
    return params


def prepare_params(params):
    """One-time host-side layout prep.

    * Hidden-layer lane dims zero-padded up to multiples of 128 (e.g. 64 -> 128)
      so every vector/MXU op in the chain is on full, unmasked vregs; the padded
      activation lanes stay exactly zero (zero weight cols + zero bias, leaky_relu(0)=0).
    * Hidden weights cast to bf16 (halves weight DMA); biases (1, N) f32.
    * Scalar head (out_dim == 1) kept as a (1, N_pad) f32 row for the VPU+XLU path.
    """
    n_layers = len(params)
    prepared = []
    prev_pad = params[0][0].shape[0]  # input feature count (1024 here, already 128-aligned)
    for i, (w, b) in enumerate(params):
        fan_in, fan_out = w.shape
        is_last = i == n_layers - 1
        if prev_pad != fan_in:  # match previous layer's padded output width
            w = jnp.pad(w, ((0, prev_pad - fan_in), (0, 0)))
        if is_last:
            if fan_out == 1:
                w_prep = jnp.transpose(w).astype(jnp.float32)        # (1, prev_pad)
                b_prep = b.reshape(1, 1).astype(jnp.float32)
            else:
                w_prep = w.astype(jnp.bfloat16)                      # (prev_pad, out)
                b_prep = b.reshape(1, -1).astype(jnp.float32)
            prepared.append((w_prep, b_prep))
        else:
            out_pad = _round_up(fan_out, 128)
            if out_pad != fan_out:
                w = jnp.pad(w, ((0, 0), (0, out_pad - fan_out)))
                b = jnp.pad(b, (0, out_pad - fan_out))
            prepared.append((w.astype(jnp.bfloat16), b.reshape(1, -1).astype(jnp.float32)))
            prev_pad = out_pad
    return prepared


# ----------------------------------------------------------------------------
# Pure-JAX reference (same prepared bf16/padded weights, exact sigmoid)
# ----------------------------------------------------------------------------
def _reference_forward(prepared_params, x, out_dim):
    y = x.reshape(x.shape[0], -1)
    n_hidden = len(prepared_params) - 1
    if n_hidden == 0:
        acc = y
    else:
        yb = y.astype(jnp.bfloat16)
        for i in range(n_hidden):
            w, b = prepared_params[i]
            acc = jnp.dot(yb, w, preferred_element_type=jnp.float32) + b
            acc = jnp.maximum(acc, 0.01 * acc)
            if i < n_hidden - 1:
                yb = acc.astype(jnp.bfloat16)
    w_last, b_last = prepared_params[-1]
    if out_dim == 1:
        logits = jnp.sum(acc * w_last, axis=-1, keepdims=True) + b_last
    else:
        logits = jnp.dot(acc.astype(jnp.bfloat16), w_last,
                         preferred_element_type=jnp.float32) + b_last
    return jax.nn.sigmoid(logits)


if __name__ == "__main__":
    config = {
        "input_size": 4 * 16 * 16,   # flatten of (C=4, H=16, W=16)
        "hidden_dim": [128, 64],
        "output_dim": 1,
    }

    key = jax.random.PRNGKey(0)
    key, kx, kp = jax.random.split(key, 3)

    # Input consistent with the implied flatten: NCHW image batch.
    x = jax.random.normal(kx, (2, 4, 16, 16), jnp.float32)
    params = init_params(config, kp)
    prepared = prepare_params(params)

    forward = make_disc_forward(prepared, config["output_dim"])
    out = jax.block_until_ready(forward(prepared, x))

    ref = jax.block_until_ready(_reference_forward(prepared, x, config["output_dim"]))
    assert out.shape == (2, config["output_dim"])
    # Same bf16 matmul path as the reference; tanh-form sigmoid is exact, so any
    # difference is just Mosaic-vs-XLA rounding.
    assert jnp.allclose(out, ref, atol=1e-2, rtol=1e-2), "mismatch vs reference"

    print("KERNEL_OK")
</pallas_src>

<mosaic_0001>
module attributes {stable_mosaic.version = 11 : i64} {
  func.func @_mlp_fused_kernel(%arg0: memref<2x1024xf32, #tpu.memory_space<vmem>>, %arg1: memref<1024x128xbf16, #tpu.memory_space<vmem>>, %arg2: memref<1x128xf32, #tpu.memory_space<vmem>>, %arg3: memref<128x128xbf16, #tpu.memory_space<vmem>>, %arg4: memref<1x128xf32, #tpu.memory_space<vmem>>, %arg5: memref<1x128xf32, #tpu.memory_space<vmem>>, %arg6: memref<1x1xf32, #tpu.memory_space<vmem>>, %arg7: memref<2x1xf32, #tpu.memory_space<vmem>>) attributes {dimension_semantics = [], scalar_prefetch = 0 : i64, scratch_operands = 0 : i64, tpu.core_type = #tpu.core_type<tc>} {
    %c0 = arith.constant 0 : index
    %c0_0 = arith.constant 0 : index
    %0 = vector.load %arg0[%c0, %c0_0] : memref<2x1024xf32, #tpu.memory_space<vmem>>, vector<2x1024xf32>
    %1 = arith.truncf %0 : vector<2x1024xf32> to vector<2x1024xbf16>
    %c0_1 = arith.constant 0 : index
    %c0_2 = arith.constant 0 : index
    %2 = vector.load %arg1[%c0_1, %c0_2] : memref<1024x128xbf16, #tpu.memory_space<vmem>>, vector<1024x128xbf16>
    %c0_3 = arith.constant 0 : index
    %c0_4 = arith.constant 0 : index
    %3 = vector.load %arg2[%c0_3, %c0_4] : memref<1x128xf32, #tpu.memory_space<vmem>>, vector<1x128xf32>
    %cst = arith.constant dense<0.000000e+00> : vector<2x128xf32>
    %4 = tpu.matmul %1, %2, %cst {dimension_numbers = #tpu.dot_dimension_numbers<[1], [0], [0], [1], [0, 0, 1, 1], [], []>} : vector<2x1024xbf16>, vector<1024x128xbf16>, vector<2x128xf32> -> vector<2x128xf32>
    %5 = vector.broadcast %3 : vector<1x128xf32> to vector<2x128xf32>
    %6 = arith.addf %4, %5 : vector<2x128xf32>
    %cst_5 = arith.constant 0.00999999977 : f32
    %7 = vector.broadcast %cst_5 : f32 to vector<2x128xf32>
    %8 = arith.mulf %7, %6 : vector<2x128xf32>
    %9 = arith.maximumf %6, %8 : vector<2x128xf32>
    %10 = arith.truncf %9 : vector<2x128xf32> to vector<2x128xbf16>
    %c0_6 = arith.constant 0 : index
    %c0_7 = arith.constant 0 : index
    %11 = vector.load %arg3[%c0_6, %c0_7] : memref<128x128xbf16, #tpu.memory_space<vmem>>, vector<128x128xbf16>
    %c0_8 = arith.constant 0 : index
    %c0_9 = arith.constant 0 : index
    %12 = vector.load %arg4[%c0_8, %c0_9] : memref<1x128xf32, #tpu.memory_space<vmem>>, vector<1x128xf32>
    %cst_10 = arith.constant dense<0.000000e+00> : vector<2x128xf32>
    %13 = tpu.matmul %10, %11, %cst_10 {dimension_numbers = #tpu.dot_dimension_numbers<[1], [0], [0], [1], [0, 0, 1, 1], [], []>} : vector<2x128xbf16>, vector<128x128xbf16>, vector<2x128xf32> -> vector<2x128xf32>
    %14 = vector.broadcast %12 : vector<1x128xf32> to vector<2x128xf32>
    %15 = arith.addf %13, %14 : vector<2x128xf32>
    %cst_11 = arith.constant 0.00999999977 : f32
    %16 = vector.broadcast %cst_11 : f32 to vector<2x128xf32>
    %17 = arith.mulf %16, %15 : vector<2x128xf32>
    %18 = arith.maximumf %15, %17 : vector<2x128xf32>
    %c0_12 = arith.constant 0 : index
    %c0_13 = arith.constant 0 : index
    %19 = vector.load %arg5[%c0_12, %c0_13] : memref<1x128xf32, #tpu.memory_space<vmem>>, vector<1x128xf32>
    %c0_14 = arith.constant 0 : index
    %c0_15 = arith.constant 0 : index
    %20 = vector.load %arg6[%c0_14, %c0_15] : memref<1x1xf32, #tpu.memory_space<vmem>>, vector<1x1xf32>
    %21 = vector.broadcast %19 : vector<1x128xf32> to vector<2x128xf32>
    %22 = arith.mulf %18, %21 : vector<2x128xf32>
    %cst_16 = arith.constant dense<0.000000e+00> : vector<2xf32>
    %23 = vector.multi_reduction <add>, %22, %cst_16 [1] : vector<2x128xf32> to vector<2xf32>
    %24 = vector.shape_cast %23 : vector<2xf32> to vector<2x1xf32>
    %25 = vector.broadcast %20 : vector<1x1xf32> to vector<2x1xf32>
    %26 = arith.addf %24, %25 : vector<2x1xf32>
    %cst_17 = arith.constant 5.000000e-01 : f32
    %27 = vector.broadcast %cst_17 : f32 to vector<2x1xf32>
    %28 = arith.mulf %27, %26 : vector<2x1xf32>
    %29 = math.tanh %28 : vector<2x1xf32>
    %cst_18 = arith.constant 5.000000e-01 : f32
    %30 = vector.broadcast %cst_18 : f32 to vector<2x1xf32>
    %31 = arith.mulf %30, %29 : vector<2x1xf32>
    %cst_19 = arith.constant 5.000000e-01 : f32
    %32 = vector.broadcast %cst_19 : f32 to vector<2x1xf32>
    %33 = arith.addf %31, %32 : vector<2x1xf32>
    %c0_20 = arith.constant 0 : index
    %c0_21 = arith.constant 0 : index
    %34 = vector.load %arg7[%c0_20, %c0_21] : memref<2x1xf32, #tpu.memory_space<vmem>>, vector<2x1xf32>
    tpu.vector_store %arg7[%c0_20, %c0_21], %33 {strides = array<i32>} : memref<2x1xf32, #tpu.memory_space<vmem>>, vector<2x1xf32>,
    return
  }
}

</mosaic_0001>

<bundles_post_ra>
// kernel: forward.1
= control target key start
LH: loop header
LB: loop body
LE: loop exit
PB: predicated region body
PF: predicated region fallthrough
CT: control target
= control target key end

     0   :  { %s1320_s0 = inlined_call_operand.vmem [shape: f32[2,1024], index: 0, kind: input, shape index: {}]   ;;  %s1321_s1 = inlined_call_operand.hbm [shape: bf16[1024,128], index: 1, kind: input, shape index: {}]   ;;  %s1322_s2 = inlined_call_operand.vmem [shape: f32[1,128], index: 2, kind: input, shape index: {}]   ;;  %s1323_s3 = inlined_call_operand.vmem [shape: bf16[128,128], index: 3, kind: input, shape index: {}]   ;;  %s1324_s4 = inlined_call_operand.vmem [shape: f32[1,128], index: 4, kind: input, shape index: {}]   ;;  %s1325_s5 = inlined_call_operand.vmem [shape: f32[1,128], index: 5, kind: input, shape index: {}]   ;;  %s1326_s6 = inlined_call_operand.<no memory space> [shape: f32[1,1], index: 6, kind: input, shape index: {}]   ;;  %s1327_s7 = inlined_call_operand.vmem [shape: f32[2,1], index: 7, kind: output, shape index: {}]  }
   0x1   :  { %v12_v0 = vstv %s1326_s6 }
   0x2   :  { %13 = vst [vmem:[#allocation2] sm:$0x1] %v12_v0 }
   0x3   :  { %14 = vsyncpa [#allocation4], 0  ;;  %s1220_s26 = smov [#allocation3]  }
   0x4   :  { %s22_s27 = sshll.u32 %s1220_s26, 4  ;;  %s23_s27 = int_to_ptr.vmem [resolvable:$true] %s22_s27 }
   0x5   :  { %s1206_s28 = scalar_lea.vmem %s23_s27, 8192  ;;  %p1211_p1 = scmp.lt.s32.totalorder %s23_s27, %s23_s27 }
   0x6   :  { %p1207_p0 = scmp.ne.s32.totalorder %s23_s27, %s1206_s28  ;;  %p1212_p2 = scmp.lt.s32.totalorder %s1206_s28, %s1206_s28 }
   0x8   :  { %p1213_p3 = por %p1212_p2, %p1211_p1 }
   0xa   :  { %p1214_p4 = pnand %p1213_p3, %p1207_p0 }
   0xc   :  { %1217 = shalt.err (!%p1214_p4)
}
   0xd   :  { %s1221_s29 = smov 64   ;;  %s1222_s30 = smov 4  }
   0xe   :  { %28 = dma.hbm_to_vmem [thread:$0]  %s1321_s1, 8192, %s23_s27, [#allocation4], %s1221_s29, %s1221_s29, %s1222_s30  }
   0xf   :  { %1218 = dma.done.wait [#allocation4], 8192  }
  0x10   :  { %1219 = vsyncadd [#allocation4], 4294959104  ;;  %v1122_v1 = vld [vmem:[#allocation3 + $0x78] sm:$0xff]   ;;  %v1126_v5 = vld [vmem:[#allocation3 + $0x70] sm:$0xff]   ;;  %v1223_v23 = vmov 1983009808   ;;  %v51_v25 = vlaneseq }
  0x11   :  { %v1123_v2 = vld [vmem:[#allocation3 + $0xf8] sm:$0xff]   ;;  %999 = vmatprep.subr.bf16.mxu0 %v1122_v1  ;;  %v1127_v6 = vld [vmem:[#allocation3 + $0xf0] sm:$0xff]   ;;  %v1130_v9 = vld [vmem:[#allocation3 + $0x68] sm:$0xff]   ;;  %v49_v24 = vunpack.c.l.s4 %v1223_v23  ;;  %vm1225_vm0 = vmmov 0   ;;  %vm901_vm1 = vcmask 1041408   ;;  %vm916_vm2 = vcmask 1024  }
  0x12   :  { %v1124_v3 = vld [vmem:[#allocation3 + $0x38] sm:$0xff]   ;;  %1021 = vmatprep.subr.bf16.mxu1 %v1123_v2  ;;  %v1128_v7 = vld [vmem:[#allocation3 + $0x30] sm:$0xff]   ;;  %v1131_v10 = vld [vmem:[#allocation3 + $0xe8] sm:$0xff]   ;;  %v52_v31 = vshrl.u32 %v51_v25, 7 }
  0x13   :  { %v1125_v4 = vld [vmem:[#allocation3 + $0xb8] sm:$0xff]   ;;  %1000 = vmatpush3.bf16.msra.mxu0 %v1124_v3  ;;  %v1129_v8 = vld [vmem:[#allocation3 + $0xb0] sm:$0xff]   ;;  %v1132_v11 = vld [vmem:[#allocation3 + $0x28] sm:$0xff]   ;;  %v50_v30 = vunpack.c.0.s8 %v49_v24 }
  0x14   :  { %1022 = vmatpush3.bf16.msra.mxu1 %v1125_v4  ;;  %1001 = vmatprep.subr.bf16.mxu0 %v1126_v5  ;;  %v1133_v12 = vld [vmem:[#allocation3 + $0xa8] sm:$0xff]   ;;  %v1134_v13 = vld [vmem:[#allocation3 + $0x60] sm:$0xff]   ;;  %v1138_v17 = vld [vmem:[#allocation3 + $0x58] sm:$0xff]  }
  0x15   :  { %1023 = vmatprep.subr.bf16.mxu1 %v1127_v6  ;;  %v1135_v14 = vld [vmem:[#allocation3 + $0xe0] sm:$0xff]   ;;  %v1139_v18 = vld [vmem:[#allocation3 + $0xd8] sm:$0xff]   ;;  %v1142_v21 = vld [vmem:[#allocation3 + $0x50] sm:$0xff]   ;;  %v1272_v36 = vsub.s32 %v50_v30, %v52_v31 }
  0x16   :  { %v1136_v15 = vld [vmem:[#allocation3 + $0x20] sm:$0xff]   ;;  %v1140_v19 = vld [vmem:[#allocation3 + $0x18] sm:$0xff]   ;;  %v1143_v22 = vld [vmem:[#allocation3 + $0xd0] sm:$0xff]  }
  0x17   :  { %1002 = vmatpush3.bf16.msra.mxu0 %v1128_v7  ;;  %v1137_v16 = vld [vmem:[#allocation3 + $0xa0] sm:$0xff]   ;;  %v1141_v20 = vld [vmem:[#allocation3 + $0x98] sm:$0xff]   ;;  %v1144_v26 = vld [vmem:[#allocation3 + $0x10] sm:$0xff]  }
  0x18   :  { %1024 = vmatpush3.bf16.msra.mxu1 %v1129_v8  ;;  %1003 = vmatprep.subr.bf16.mxu0 %v1130_v9  ;;  %v1145_v27 = vld [vmem:[#allocation3 + $0x90] sm:$0xff]   ;;  %v1146_v28 = vld [vmem:[#allocation3 + $0x48] sm:$0xff]   ;;  %v1150_v34 = vld [vmem:[#allocation3 + $0x40] sm:$0xff]  }
  0x19   :  { %1025 = vmatprep.subr.bf16.mxu1 %v1131_v10  ;;  %v1147_v29 = vld [vmem:[#allocation3 + $0xc8] sm:$0xff]   ;;  %v1151_v35 = vld [vmem:[#allocation3 + $0xc0] sm:$0xff]   ;;  %v1155_v42 = vld [vmem:[#allocation3 + $0x178] sm:$0xff]  }
  0x1a   :  { %v1148_v32 = vld [vmem:[#allocation3 + $0x8] sm:$0xff]   ;;  %v1152_v37 = vld [vmem:[#allocation3] sm:$0xff]   ;;  %v1156_v43 = vld [vmem:[#allocation3 + $0x1f8] sm:$0xff]  }
  0x1b   :  { %1004 = vmatpush3.bf16.msra.mxu0 %v1132_v11  ;;  %v1149_v33 = vld [vmem:[#allocation3 + $0x88] sm:$0xff]   ;;  %v1153_v38 = vld [vmem:[#allocation3 + $0x80] sm:$0xff]   ;;  %v1157_v47 = vld [vmem:[#allocation3 + $0x138] sm:$0xff]  }
  0x1c   :  { %1026 = vmatpush3.bf16.msra.mxu1 %v1133_v12  ;;  %1005 = vmatprep.subr.bf16.mxu0 %v1134_v13  ;;  %v43_v39 = vld [vmem:[%s1320_s0] sm:$0xff]  ;;  %v1159_v52 = vld [vmem:[#allocation3 + $0x170] sm:$0xff]   ;;  %v1163_v57 = vld [vmem:[#allocation3 + $0x168] sm:$0xff]  }
  0x1d   :  { %1027 = vmatprep.subr.bf16.mxu1 %v1135_v14  ;;  %v54_v40 = vrot.slane %v43_v39, %v1272_v36  ;;  %v47_v41 = vcombine.high %v43_v39, %v43_v39  ;;  %v1158_v50 = vld [vmem:[#allocation3 + $0x1b8] sm:$0xff]   ;;  %v1160_v54 = vld [vmem:[#allocation3 + $0x1f0] sm:$0xff]   ;;  %v1164_v58 = vld [vmem:[#allocation3 + $0x1e8] sm:$0xff]  }
  0x1e   :  { %v1161_v55 = vld [vmem:[#allocation3 + $0x130] sm:$0xff]   ;;  %v1165_v59 = vld [vmem:[#allocation3 + $0x128] sm:$0xff]   ;;  %v1167_v61 = vld [vmem:[#allocation3 + $0x160] sm:$0xff]  }
  0x1f   :  { %1006 = vmatpush3.bf16.msra.mxu0 %v1136_v15  ;;  %v62_v44 = vcombine.high %v54_v40, %v54_v40  ;;  %v61_v45 = vrot.slane %v47_v41, %v1272_v36  ;;  %v89_v46 = vpack.c.bf16 %v54_v40, %v54_v40  ;;  %v1162_v56 = vld [vmem:[#allocation3 + $0x1b0] sm:$0xff]   ;;  %v1166_v60 = vld [vmem:[#allocation3 + $0x1a8] sm:$0xff]   ;;  %v1168_v62 = vld [vmem:[#allocation3 + $0x1e0] sm:$0xff]  }
  0x20   :  { %1028 = vmatpush3.bf16.msra.mxu1 %v1137_v16  ;;  %1007 = vmatprep.subr.bf16.mxu0 %v1138_v17  ;;  %v1169_v63 = vld [vmem:[#allocation3 + $0x120] sm:$0xff]   ;;  %v1171_v1 = vld [vmem:[#allocation3 + $0x158] sm:$0xff]   ;;  %v1175_v5 = vld [vmem:[#allocation3 + $0x150] sm:$0xff]  }
  0x21   :  { %1029 = vmatprep.subr.bf16.mxu1 %v1139_v18  ;;  %v90_v48 = vpack.c.bf16 %v62_v44, %v62_v44  ;;  %v63_v49 = vcombine.high %v61_v45, %v61_v45  ;;  %v91_v51 = vpack.c.bf16 %v61_v45, %v61_v45  ;;  %v1170_v0 = vld [vmem:[#allocation3 + $0x1a0] sm:$0xff]   ;;  %v1172_v2 = vld [vmem:[#allocation3 + $0x1d8] sm:$0xff]   ;;  %v1176_v6 = vld [vmem:[#allocation3 + $0x1d0] sm:$0xff]  }
  0x22   :  { %v1173_v3 = vld [vmem:[#allocation3 + $0x118] sm:$0xff]   ;;  %v1177_v7 = vld [vmem:[#allocation3 + $0x110] sm:$0xff]   ;;  %v1179_v9 = vld [vmem:[#allocation3 + $0x148] sm:$0xff]  }
  0x23   :  { %1008 = vmatpush3.bf16.msra.mxu0 %v1140_v19  ;;  %648 = vmatprep.mubr.bf16.mxu0 %v90_v48  ;;  %v92_v53 = vpack.c.bf16 %v63_v49, %v63_v49  ;;  %v1174_v4 = vld [vmem:[#allocation3 + $0x198] sm:$0xff]   ;;  %v1178_v8 = vld [vmem:[#allocation3 + $0x190] sm:$0xff]   ;;  %v1180_v10 = vld [vmem:[#allocation3 + $0x1c8] sm:$0xff]  }
  0x24   :  { %1030 = vmatpush3.bf16.msra.mxu1 %v1141_v20  ;;  %1009 = vmatprep.subr.bf16.mxu0 %v1142_v21  ;;  %v1181_v11 = vld [vmem:[#allocation3 + $0x108] sm:$0xff]   ;;  %v1183_v13 = vld [vmem:[#allocation3 + $0x140] sm:$0xff]   ;;  %v923_v45 = vld [vmem:[%s1322_s2] ss:$0 sm:$0xff] }
  0x25   :  { %1031 = vmatprep.subr.bf16.mxu1 %v1143_v22  ;;  %688 = vmatprep.mubr.bf16.mxu1 %v92_v53  ;;  %v1182_v12 = vld [vmem:[#allocation3 + $0x188] sm:$0xff]   ;;  %v1184_v14 = vld [vmem:[#allocation3 + $0x1c0] sm:$0xff]  }
  0x26   :  { %v1185_v15 = vld [vmem:[#allocation3 + $0x100] sm:$0xff]  }
  0x27   :  { %1010 = vmatpush3.bf16.msra.mxu0 %v1144_v26  ;;  %v44_v16 = vld [vmem:[%s1320_s0 + $0x8] sm:$0xff]  ;;  %v1191_v31 = vld [vmem:[%s1323_s3 + $0x20] sm:$0xff]  }
  0x28   :  { %1032 = vmatpush3.bf16.msra.mxu1 %v1145_v27  ;;  %1011 = vmatprep.subr.bf16.mxu0 %v1146_v28  ;;  %v1186_v17 = vld [vmem:[#allocation3 + $0x180] sm:$0xff]   ;;  %v71_v18 = vrot.slane %v44_v16, %v1272_v36  ;;  %v64_v19 = vcombine.high %v44_v16, %v44_v16  ;;  %v1188_v27 = vld [vmem:[%s1323_s3 + $0x38] sm:$0xff]   ;;  %v1224_v28 = vmov 0.0  }
  0x29   :  { %1033 = vmatprep.subr.bf16.mxu1 %v1147_v29  ;;  %v1189_v29 = vld [vmem:[%s1323_s3 + $0x30] sm:$0xff]   ;;  %v1190_v30 = vld [vmem:[%s1323_s3 + $0x28] sm:$0xff]  }
  0x2a   :  { %v79_v20 = vcombine.high %v71_v18, %v71_v18  ;;  %v78_v21 = vrot.slane %v64_v19, %v1272_v36  ;;  %v93_v22 = vpack.c.bf16 %v71_v18, %v71_v18 }
  0x2b   :  { %1012 = vmatpush3.bf16.msra.mxu0 %v1148_v32  ;;  %v1192_v32 = vld [vmem:[%s1323_s3 + $0x18] sm:$0xff]  }
  0x2c   :  { %1034 = vmatpush3.bf16.msra.mxu1 %v1149_v33  ;;  %1013 = vmatprep.subr.bf16.mxu0 %v1150_v34  ;;  %v94_v23 = vpack.c.bf16 %v79_v20, %v79_v20  ;;  %v80_v24 = vcombine.high %v78_v21, %v78_v21  ;;  %v95_v25 = vpack.c.bf16 %v78_v21, %v78_v21  ;;  %v1193_v33 = vld [vmem:[%s1323_s3 + $0x10] sm:$0xff]   ;;  %v1194_v34 = vld [vmem:[%s1323_s3 + $0x8] sm:$0xff]  }
  0x2d   :  { %1035 = vmatprep.subr.bf16.mxu1 %v1151_v35  ;;  %v1195_v35 = vld [vmem:[%s1323_s3] sm:$0xff]  }
  0x2e   :  { %v96_v26 = vpack.c.bf16 %v80_v24, %v80_v24 }
  0x2f   :  { %1014 = vmatpush3.bf16.msra.mxu0 %v1152_v37 }
  0x30   :  { %1036 = vmatpush3.bf16.msra.mxu1 %v1153_v38  ;;  %1043 = vmatprep.subr.bf16.mxu0 %v1155_v42 }
  0x31   :  { %1065 = vmatprep.subr.bf16.mxu1 %v1156_v43 }
  0x32   :  { %649 = vmatmul.mubr.bf16.vlgmr.msra.gmra.mxu0 %v89_v46 }
  0x33   :  { %1044 = vmatpush3.bf16.msra.mxu0 %v1157_v47  ;;  %689 = vmatmul.mubr.bf16.vlgmr.msra.gmra.mxu1 %v91_v51 }
  0x34   :  { %1045 = vmatprep.subr.bf16.mxu0 %v1159_v52  ;;  %1066 = vmatpush3.bf16.msra.mxu1 %v1158_v50 }
  0x35   :  { %1067 = vmatprep.subr.bf16.mxu1 %v1160_v54  ;;  %728 = vmatprep.mubr.bf16.mxu0 %v94_v23 }
  0x36   :  { %768 = vmatprep.mubr.bf16.mxu1 %v96_v26 }
  0x37   :  { %1046 = vmatpush3.bf16.msra.mxu0 %v1161_v55 }
  0x38   :  { %1047 = vmatprep.subr.bf16.mxu0 %v1163_v57  ;;  %1068 = vmatpush3.bf16.msra.mxu1 %v1162_v56 }
  0x39   :  { %1069 = vmatprep.subr.bf16.mxu1 %v1164_v58 }
  0x3b   :  { %1048 = vmatpush3.bf16.msra.mxu0 %v1165_v59 }
  0x3c   :  { %1049 = vmatprep.subr.bf16.mxu0 %v1167_v61  ;;  %1070 = vmatpush3.bf16.msra.mxu1 %v1166_v60 }
  0x3d   :  { %1071 = vmatprep.subr.bf16.mxu1 %v1168_v62 }
  0x3f   :  { %1050 = vmatpush3.bf16.msra.mxu0 %v1169_v63 }
  0x40   :  { %1051 = vmatprep.subr.bf16.mxu0 %v1171_v1  ;;  %1072 = vmatpush3.bf16.msra.mxu1 %v1170_v0  ;;  %v988_v0 = vld [vmem:[%s1324_s4] ss:$0 sm:$0xff] }
  0x41   :  { %1073 = vmatprep.subr.bf16.mxu1 %v1172_v2 }
  0x43   :  { %1052 = vmatpush3.bf16.msra.mxu0 %v1173_v3 }
  0x44   :  { %1053 = vmatprep.subr.bf16.mxu0 %v1175_v5  ;;  %1074 = vmatpush3.bf16.msra.mxu1 %v1174_v4 }
  0x45   :  { %1075 = vmatprep.subr.bf16.mxu1 %v1176_v6  ;;  %v997_v6 = vld [vmem:[%s1325_s5] ss:$0 sm:$0xff] }
  0x47   :  { %1054 = vmatpush3.bf16.msra.mxu0 %v1177_v7 }
  0x48   :  { %1055 = vmatprep.subr.bf16.mxu0 %v1179_v9  ;;  %1076 = vmatpush3.bf16.msra.mxu1 %v1178_v8 }
  0x49   :  { %1077 = vmatprep.subr.bf16.mxu1 %v1180_v10 }
  0x4b   :  { %1056 = vmatpush3.bf16.msra.mxu0 %v1181_v11  ;;  %v998_v11 = vld [vmem:[#allocation2] ss:$0 sm:$0xff] }
  0x4c   :  { %1057 = vmatprep.subr.bf16.mxu0 %v1183_v13  ;;  %1078 = vmatpush3.bf16.msra.mxu1 %v1182_v12 }
  0x4d   :  { %1079 = vmatprep.subr.bf16.mxu1 %v1184_v14 }
  0x4f   :  { %1058 = vmatpush3.bf16.msra.mxu0 %v1185_v15 }
  0x50   :  { %1080 = vmatpush3.bf16.msra.mxu1 %v1186_v17  ;;  %1096 = vmatprep.subr.bf16.mxu0 %v1224_v28 }
  0x52   :  { %729 = vmatmul.mubr.bf16.vlgmr.msra.gmra.mxu0 %v93_v22 }
  0x53   :  { %769 = vmatmul.mubr.bf16.vlgmr.msra.gmra.mxu1 %v95_v25  ;;  %1097 = vmatpush3.bf16.msra.mxu0 %v1188_v27 }
  0x54   :  { %1098 = vmatprep.subr.bf16.mxu0 %v1224_v28  ;;  %1112 = vmatprep.mubr.msk.bf16.mxu0 %vm1225_vm0, %v1224_v28 }
  0x57   :  { %1099 = vmatpush3.bf16.msra.mxu0 %v1189_v29 }
  0x58   :  { %1100 = vmatprep.subr.bf16.mxu0 %v1224_v28 }
  0x5b   :  { %1101 = vmatpush3.bf16.msra.mxu0 %v1190_v30 }
  0x5c   :  { %1102 = vmatprep.subr.bf16.mxu0 %v1224_v28 }
  0x5f   :  { %1103 = vmatpush3.bf16.msra.mxu0 %v1191_v31 }
  0x60   :  { %1104 = vmatprep.subr.bf16.mxu0 %v1224_v28 }
  0x63   :  { %1105 = vmatpush3.bf16.msra.mxu0 %v1192_v32 }
  0x64   :  { %1106 = vmatprep.subr.bf16.mxu0 %v1224_v28 }
  0x67   :  { %1107 = vmatpush3.bf16.msra.mxu0 %v1193_v33 }
  0x68   :  { %1108 = vmatprep.subr.bf16.mxu0 %v1224_v28 }
  0x6b   :  { %1109 = vmatpush3.bf16.msra.mxu0 %v1194_v34 }
  0x6c   :  { %1110 = vmatprep.subr.bf16.mxu0 %v1224_v28 }
  0x6f   :  { %1111 = vmatpush3.bf16.msra.mxu0 %v1195_v35 }
  0xf2   :  { %v1015_v36 = vpop.f32.mrf.mxu0 }
  0xf3   :  { %v1037_v37 = vpop.f32.mrf.mxu1 }
  0xf4   :  { %v1016_v38 = vpop.f32.mrf.mxu0 }
  0xf5   :  { %v1038_v39 = vpop.f32.mrf.mxu1  ;;  %v1017_v44 = vadd.f32 %v1016_v38, %v1015_v36 }
  0xf6   :  { %v1018_v40 = vpop.f32.mrf.mxu0  ;;  %v1039_v47 = vadd.f32 %v1038_v39, %v1037_v37 }
  0xf7   :  { %v1040_v41 = vpop.f32.mrf.mxu1  ;;  %v651_v46 = vadd.f32 %v1017_v44, %v923_v45 }
  0xf8   :  { %v1019_v42 = vpop.f32.mrf.mxu0 }
  0xf9   :  { %v1041_v43 = vpop.f32.mrf.mxu1  ;;  %v691_v51 = vadd.f32 %v1039_v47, %v651_v46 }
 0x112   :  { %v1059_v48 = vpop.f32.mrf.mxu0 }
 0x113   :  { %v1081_v49 = vpop.f32.mrf.mxu1 }
 0x114   :  { %v1060_v50 = vpop.f32.mrf.mxu0 }
 0x115   :  { %v1061_v52 = vadd.f32 %v1060_v50, %v1059_v48  ;;  %v1082_v53 = vpop.f32.mrf.mxu1 }
 0x116   :  { %v1062_v54 = vpop.f32.mrf.mxu0  ;;  %v1083_v56 = vadd.f32 %v1082_v53, %v1081_v49 }
 0x117   :  { %v731_v55 = vadd.f32 %v1061_v52, %v691_v51  ;;  %v1084_v57 = vpop.f32.mrf.mxu1 }
 0x118   :  { %v1063_v58 = vpop.f32.mrf.mxu0 }
 0x119   :  { %v771_v59 = vadd.f32 %v1083_v56, %v731_v55  ;;  %v1085_v60 = vpop.f32.mrf.mxu1 }
 0x11b   :  { %v776_v61 = vmul.f32 0.01, %v771_v59 }
 0x11d   :  { %v777_v62 = vmax.f32 %v771_v59, %v776_v61 }
 0x11f   :  { %v778_v63 = vpack.c.bf16 %v777_v62, %v777_v62 }
 0x121   :  { %1113 = vmatmul.mubr.bf16.vlgmr.msra.gmra.mxu0 %v778_v63 }
 0x1e1   :  { %v884_v1 = vpop.f32.mrf.mxu0 }
 0x1e2   :  { %v885_v2 = vadd.f32 %v988_v0, %v884_v1 }
 0x1e3   :  { %v1114_v3 = vpop.f32.mrf.mxu0 }
 0x1e4   :  { %v890_v4 = vmul.f32 0.01, %v885_v2 }
 0x1e5   :  { %v887_v5 = vpop.f32.mrf.mxu0 }
 0x1e6   :  { %v891_v7 = vmax.f32 %v885_v2, %v890_v4 }
 0x1e7   :  { %v1115_v8 = vpop.f32.mrf.mxu0 }
 0x1e8   :  { %v900_v9 = vmul.f32 %v997_v6, %v891_v7 }
 0x1ea   :  { %v902_v10 = vsel %vm901_vm1, %v900_v9, 0.0 }
 0x1eb   :  { %903 = vadd.xlane.f32.xlu0 %v902_v10 }
 0x274   :  { %v904_v12 = vpop.xlane.xlu0 %903 }
 0x275   :  { %v911_v13 = vadd.f32 %v998_v11, %v904_v12 }
 0x277   :  { %v912_v14 = vmul.f32 0.5, %v911_v13 }
 0x279   :  { %1196 = vtanh.f32 %v912_v14 }
 0x286   :  { %v1197_v15 = vpop.eup %1196 }
 0x287   :  { %v914_v16 = vmul.f32 0.5, %v1197_v15 }
 0x289   :  { %v915_v17 = vadd.f32 0.5, %v914_v16 }
 0x28b   :  { %917 = vst.msk [vmem:[%s1327_s7] sm:$0x3] %vm916_vm2, %v915_v17 }
 0x28c   :  { %922 = vsyncpa [#allocation4], 1 }

</bundles_post_ra>
